<compile_context>
chip_gen: v5e
topology: v5e:2x2
jax: 0.10.0
libtpu: 0.0.40
codegen_flags: <defaults>
</compile_context>

<pallas_src>
import functools

import jax
import jax.numpy as jnp
from jax.experimental import pallas as pl
from jax.experimental.pallas import tpu as pltpu


# ----------------------------- kernels --------------------------------------


def _rms_kernel(x_ref, w_ref, o_ref, *, eps, inv_h):
    # x_ref: (tm, Hp) orig dtype, w_ref: (1, Hp) stored dtype, o_ref: (tm, Hp)
    x = x_ref[...].astype(jnp.float32)
    var = jnp.sum(x * x, axis=-1, keepdims=True) * inv_h
    inv = jax.lax.rsqrt(var + eps)
    normed = (x * inv).astype(o_ref.dtype)            # torch: x.to(orig_dtype)
    w = w_ref[...].astype(jnp.float32)
    o_ref[...] = (normed.astype(jnp.float32) * w).astype(o_ref.dtype)


def _add_rms_kernel(x_ref, r_ref, w_ref, o_ref, res_ref, *, eps, inv_h):
    # fused residual add: x = x + residual (in f32); new residual = x (orig dtype)
    x = x_ref[...].astype(jnp.float32) + r_ref[...].astype(jnp.float32)
    res_ref[...] = x.astype(res_ref.dtype)
    var = jnp.sum(x * x, axis=-1, keepdims=True) * inv_h
    inv = jax.lax.rsqrt(var + eps)
    normed = (x * inv).astype(o_ref.dtype)
    w = w_ref[...].astype(jnp.float32)
    o_ref[...] = (normed.astype(jnp.float32) * w).astype(o_ref.dtype)


# ----------------------------- hw query & tiling ----------------------------


def _round_up(x, m):
    return ((x + m - 1) // m) * m


def _cdiv(a, b):
    return -(-a // b)


def _sublane_pack(itemsize):
    # sublane packing: 32 rows for 8-bit, 16 for bf16/fp16, 8 for f32
    return {1: 32, 2: 16}.get(itemsize, 8)


@functools.lru_cache(maxsize=None)
def _tpu_config():
    """(vmem_capacity_bytes, num_tensorcores) with conservative fallbacks."""
    vmem_cap = 64 * 1024 * 1024          # conservative default (v7x per-TC)
    num_cores = 1
    try:
        info = pltpu.get_tpu_info()
        cap = getattr(info, "vmem_capacity_bytes", None)
        if cap:
            vmem_cap = int(cap)
        for attr in ("num_tensorcores", "tensorcore_count", "num_cores", "core_count"):
            v = getattr(info, attr, None)
            if v:
                num_cores = int(v)
                break
    except Exception:
        pass
    try:
        kind = jax.devices()[0].device_kind.lower()
        # megacore parts: two TensorCores share one device
        if any(tag in kind for tag in ("v4", "v5p", "v7")):
            num_cores = max(num_cores, 2)
    except Exception:
        pass
    return vmem_cap, num_cores


def _pick_block_rows(R, H, itemsize, n_streams, vmem_budget_bytes,
                     target_stream_bytes=4 * 1024 * 1024):
    """Largest sublane-aligned row tile whose double-buffered HBM streams plus
    the f32 temporaries fit the chip-derived VMEM budget, capped where each
    HBM stream already moves ~target_stream_bytes per grid step (past that
    the per-step overhead is negligible and bigger tiles just burn VMEM)."""
    pack = _sublane_pack(itemsize)
    # per row: n_streams double-buffered I/O tiles + ~3 live f32 (tm, H) temps
    bytes_per_row = n_streams * 2 * itemsize * H + 3 * 4 * H
    cap = max(pack, (vmem_budget_bytes // bytes_per_row) // pack * pack)
    rows_for_target = _round_up(max(pack, target_stream_bytes // (itemsize * H)), pack)
    cap = min(cap, rows_for_target)
    return min(cap, _round_up(R, pack))   # never bigger than (padded) row count


def _balance_steps(R, tm, pack, num_cores):
    """Shrink tm so the 1-D grid splits evenly across the TensorCores."""
    if num_cores <= 1:
        return tm
    steps = _cdiv(R, tm)
    if steps == 1 and R <= pack * num_cores:
        return tm                          # too few rows to feed both cores
    if steps > 1 and steps % num_cores == 0:
        return tm
    target_steps = max(num_cores, _cdiv(steps, num_cores) * num_cores)
    new_tm = _round_up(_cdiv(R, target_steps), pack)
    while new_tm > pack and _cdiv(R, new_tm) % num_cores != 0:
        new_tm -= pack
    return max(pack, new_tm)


# ----------------------------- wrapper ---------------------------------------


def rms_norm(x, weight, residual=None, *, eps=1e-6, block_rows=None):
    """Pallas RMSNorm. x: [..., H]; weight: [H].

    Returns y (same shape/dtype as x) if residual is None,
    else (y, new_residual), both same shape/dtype as x.
    """
    orig_shape = x.shape
    H = orig_shape[-1]
    x2 = x.reshape(-1, H)
    r2 = residual.reshape(-1, H) if residual is not None else None
    R = x2.shape[0]

    # Lane-padding guard: keep the output lane-dense (unmasked vst).
    Hp = _round_up(H, 128)
    w1 = weight
    if Hp != H:
        x2 = jnp.pad(x2, ((0, 0), (0, Hp - H)))
        if r2 is not None:
            r2 = jnp.pad(r2, ((0, 0), (0, Hp - H)))
        w1 = jnp.pad(weight, (0, Hp - H))
    w2 = w1.reshape(1, Hp)                 # keep stored dtype; cast in-kernel
    inv_h = 1.0 / float(H)                 # variance over the *original* width

    itemsize = jnp.dtype(x.dtype).itemsize
    n_streams = 2 if residual is None else 4       # x, (residual), y, (new_res)
    vmem_cap, num_cores = _tpu_config()
    vmem_budget = int(0.40 * vmem_cap)
    vmem_limit = int(min(int(0.75 * vmem_cap), vmem_budget + (16 << 20)))

    if block_rows is not None:
        tm = block_rows
    else:
        tm = _pick_block_rows(R, Hp, itemsize, n_streams, vmem_budget)
        tm = _balance_steps(R, tm, _sublane_pack(itemsize), num_cores)

    grid = (pl.cdiv(R, tm),)               # partial tail block handled by Pallas
    row_spec = pl.BlockSpec((tm, Hp), lambda i: (i, 0))
    w_spec = pl.BlockSpec((1, Hp), lambda i: (0, 0))
    cparams = pltpu.CompilerParams(
        dimension_semantics=("parallel",),
        vmem_limit_bytes=vmem_limit,
    )

    def _unpad(a):
        if Hp != H:
            a = a[:, :H]
        return a.reshape(orig_shape)

    if residual is None:
        y = pl.pallas_call(
            functools.partial(_rms_kernel, eps=eps, inv_h=inv_h),
            out_shape=jax.ShapeDtypeStruct((R, Hp), x.dtype),
            grid=grid,
            in_specs=[row_spec, w_spec],
            out_specs=row_spec,
            compiler_params=cparams,
        )(x2, w2)
        return _unpad(y)
    else:
        # residual (input idx 1) aliases new_res (output idx 1): in-place update.
        y, new_res = pl.pallas_call(
            functools.partial(_add_rms_kernel, eps=eps, inv_h=inv_h),
            out_shape=(
                jax.ShapeDtypeStruct((R, Hp), x.dtype),
                jax.ShapeDtypeStruct((R, Hp), x.dtype),
            ),
            grid=grid,
            in_specs=[row_spec, row_spec, w_spec],
            out_specs=(row_spec, row_spec),
            input_output_aliases={1: 1},
            compiler_params=cparams,
        )(x2, r2, w2)
        return _unpad(y), _unpad(new_res)


# ----------------------------- reference & test ------------------------------


def _ref_rms(x, weight, eps):
    xf = x.astype(jnp.float32)
    var = jnp.mean(xf * xf, axis=-1, keepdims=True)
    normed = (xf * jax.lax.rsqrt(var + eps)).astype(x.dtype)
    return (normed.astype(jnp.float32) * weight.astype(jnp.float32)).astype(x.dtype)


def _ref_add_rms(x, residual, weight, eps):
    xf = x.astype(jnp.float32) + residual.astype(jnp.float32)
    new_res = xf.astype(x.dtype)
    var = jnp.mean(xf * xf, axis=-1, keepdims=True)
    normed = (xf * jax.lax.rsqrt(var + eps)).astype(x.dtype)
    y = (normed.astype(jnp.float32) * weight.astype(jnp.float32)).astype(x.dtype)
    return y, new_res


def _close(a, b):
    return jnp.allclose(a.astype(jnp.float32), b.astype(jnp.float32),
                        atol=1e-2, rtol=1e-2)


if __name__ == "__main__":
    batch, seq, hidden = 2, 8, 256
    eps = 1e-6
    key = jax.random.PRNGKey(0)
    k1, k2, k3, k4 = jax.random.split(key, 4)

    x = jax.random.normal(k1, (batch, seq, hidden), dtype=jnp.float32).astype(jnp.bfloat16)
    residual = jax.random.normal(k2, (batch, seq, hidden), dtype=jnp.float32).astype(jnp.bfloat16)
    # module init is torch.ones(hidden); use a perturbed weight to exercise the multiply
    weight = 1.0 + 0.1 * jax.random.normal(k3, (hidden,), dtype=jnp.float32)

    # references computed up-front (residual input is alias-donated in the fused call)
    y_ref = _ref_rms(x, weight, eps)
    y2_ref, res_ref = _ref_add_rms(x, residual, weight, eps)

    # path 1: plain RMSNorm (bf16)
    y = jax.block_until_ready(rms_norm(x, weight, eps=eps))
    assert y.shape == x.shape and y.dtype == x.dtype
    assert _close(y, y_ref)

    # path 2: fused residual add + RMSNorm (bf16), residual aliased to new_res
    y2, new_res = rms_norm(x, weight, residual=residual, eps=eps)
    y2 = jax.block_until_ready(y2)
    new_res = jax.block_until_ready(new_res)
    assert y2.shape == x.shape and new_res.shape == x.shape
    assert _close(y2, y2_ref) and _close(new_res, res_ref)

    # path 3: float32 input path
    xf32 = jax.random.normal(k2, (batch, seq, hidden), dtype=jnp.float32)
    yf32 = jax.block_until_ready(rms_norm(xf32, weight, eps=eps))
    assert yf32.dtype == jnp.float32
    assert _close(yf32, _ref_rms(xf32, weight, eps))

    # path 4: ragged row count (not a multiple of the tile -> partial tail block)
    xr = jax.random.normal(k1, (3, 5, hidden), dtype=jnp.float32).astype(jnp.bfloat16)
    yr = jax.block_until_ready(rms_norm(xr, weight, eps=eps))
    assert yr.shape == xr.shape
    assert _close(yr, _ref_rms(xr, weight, eps))

    # path 5: hidden size not a multiple of 128 -> lane-padding guard path
    hidden_u = 96
    xu = jax.random.normal(k4, (2, 5, hidden_u), dtype=jnp.float32).astype(jnp.bfloat16)
    wu = 1.0 + 0.1 * jax.random.normal(k3, (hidden_u,), dtype=jnp.float32)
    yu = jax.block_until_ready(rms_norm(xu, wu, eps=eps))
    assert yu.shape == xu.shape
    assert _close(yu, _ref_rms(xu, wu, eps))

    print("KERNEL_OK")
</pallas_src>

<mosaic_0001>
module attributes {stable_mosaic.version = 11 : i64} {
  func.func @_rms_kernel(%arg0: i32, %arg1: memref<16x256xbf16, #tpu.memory_space<vmem>>, %arg2: memref<1x256xf32, #tpu.memory_space<vmem>>, %arg3: memref<16x256xbf16, #tpu.memory_space<vmem>>) attributes {dimension_semantics = [#tpu.dimension_semantics<parallel>], iteration_bounds = array<i64: 1>, scalar_prefetch = 0 : i64, scratch_operands = 0 : i64, tpu.core_type = #tpu.core_type<tc>, window_params = [{transform_indices = @transform_0, window_bounds = array<i64: 16, 256>}, {pipeline_mode = #tpu.pipeline_mode<synchronous>, transform_indices = @transform_1, window_bounds = array<i64: 1, 256>}, {transform_indices = @transform_2, window_bounds = array<i64: 16, 256>}]} {
    %c0 = arith.constant 0 : index
    %c0_0 = arith.constant 0 : index
    %0 = vector.load %arg1[%c0, %c0_0] : memref<16x256xbf16, #tpu.memory_space<vmem>>, vector<16x256xbf16>
    %1 = arith.extf %0 : vector<16x256xbf16> to vector<16x256xf32>
    %2 = arith.mulf %1, %1 : vector<16x256xf32>
    %cst = arith.constant dense<0.000000e+00> : vector<16xf32>
    %3 = vector.multi_reduction <add>, %2, %cst [1] : vector<16x256xf32> to vector<16xf32>
    %4 = vector.shape_cast %3 : vector<16xf32> to vector<16x1xf32>
    %cst_1 = arith.constant 3.906250e-03 : f32
    %5 = vector.broadcast %cst_1 : f32 to vector<16x1xf32>
    %6 = arith.mulf %4, %5 : vector<16x1xf32>
    %cst_2 = arith.constant 9.99999997E-7 : f32
    %7 = vector.broadcast %cst_2 : f32 to vector<16x1xf32>
    %8 = arith.addf %6, %7 : vector<16x1xf32>
    %9 = math.rsqrt %8 : vector<16x1xf32>
    %10 = vector.broadcast %9 : vector<16x1xf32> to vector<16x256xf32>
    %11 = arith.mulf %1, %10 : vector<16x256xf32>
    %12 = arith.truncf %11 : vector<16x256xf32> to vector<16x256xbf16>
    %c0_3 = arith.constant 0 : index
    %c0_4 = arith.constant 0 : index
    %13 = vector.load %arg2[%c0_3, %c0_4] : memref<1x256xf32, #tpu.memory_space<vmem>>, vector<1x256xf32>
    %14 = arith.extf %12 : vector<16x256xbf16> to vector<16x256xf32>
    %15 = vector.broadcast %13 : vector<1x256xf32> to vector<16x256xf32>
    %16 = arith.mulf %14, %15 : vector<16x256xf32>
    %17 = arith.truncf %16 : vector<16x256xf32> to vector<16x256xbf16>
    %c0_5 = arith.constant 0 : index
    %c0_6 = arith.constant 0 : index
    %18 = vector.load %arg3[%c0_5, %c0_6] : memref<16x256xbf16, #tpu.memory_space<vmem>>, vector<16x256xbf16>
    tpu.vector_store %arg3[%c0_5, %c0_6], %17 {strides = array<i32>} : memref<16x256xbf16, #tpu.memory_space<vmem>>, vector<16x256xbf16>,
    return
  }
  func.func @transform_0(%arg0: i32) -> (i32, i32) {
    %c0_i32 = arith.constant 0 : i32
    %c0_i32_0 = arith.constant 0 : i32
    return %arg0, %c0_i32 : i32, i32
  }
  func.func @transform_1(%arg0: i32) -> (i32, i32) {
    %c0_i32 = arith.constant 0 : i32
    %c0_i32_0 = arith.constant 0 : i32
    %c0_i32_1 = arith.constant 0 : i32
    return %c0_i32, %c0_i32_0 : i32, i32
  }
  func.func @transform_2(%arg0: i32) -> (i32, i32) {
    %c0_i32 = arith.constant 0 : i32
    %c0_i32_0 = arith.constant 0 : i32
    return %arg0, %c0_i32 : i32, i32
  }
}

</mosaic_0001>

<bundles_post_ra>
// kernel: tpu_custom_call.1
= control target key start
LH: loop header
LB: loop body
LE: loop exit
PB: predicated region body
PF: predicated region fallthrough
CT: control target
= control target key end

     0   :  { %7 = vsyncpa [#allocation3], 0  ;;  %s248_s0 = inlined_call_operand.hbm [shape: bf16[16,256], index: 0, kind: input, shape index: {}]   ;;  %s249_s1 = inlined_call_operand.hbm [shape: f32[1,256], index: 1, kind: input, shape index: {}]   ;;  %s250_s2 = inlined_call_operand.hbm [shape: bf16[16,256], index: 2, kind: output, shape index: {}]  }
   0x1   :  { %8 = vsyncpa [#allocation6], 0 }
   0x2   :  { %9 = vsyncpa [#allocation4], 0  ;;  %s14_s11 = sshll.u32 %s248_s0, 4  ;;  %s213_s12 = smov [#allocation2]   ;;  %s15_s11 = int_to_ptr.hbm [resolvable:$true] %s14_s11 }
   0x3   :  { %s16_s13 = sshll.u32 %s213_s12, 4  ;;  %s28_s16 = sshll.u32 %s249_s1, 4  ;;  %s17_s13 = int_to_ptr.vmem [resolvable:$true] %s16_s13  ;;  %s29_s16 = int_to_ptr.hbm [resolvable:$true] %s28_s16 }
   0x4   :  { %s214_s17 = smov 128   ;;  %s215_s18 = smov 8  }
   0x5   :  { %22 = dma.hbm_to_vmem [thread:$0]  %s15_s11, 256, %s17_s13, [#allocation3], %s214_s17, %s214_s17, %s215_s18  }
   0x6   :  { %s216_s19 = smov [#allocation5]  }
   0x7   :  { %s30_s20 = sshll.u32 %s216_s19, 4  ;;  %s31_s20 = int_to_ptr.vmem [resolvable:$true] %s30_s20 }
   0x8   :  { %33 = dma.hbm_to_vmem [thread:$0]  %s29_s16, 32, %s31_s20, [#allocation6]  }
   0x9   :  { %207 = dma.done.wait [#allocation3], 256  }
   0xa   :  { %208 = vsyncadd [#allocation3], 4294967040 }
   0xb   :  { %209 = dma.done.wait [#allocation6], 32  }
   0xc   :  { %210 = vsyncadd [#allocation6], 4294967264  ;;  %v42_v0 = vld [vmem:[#allocation2] sm:$0xff]  ;;  %v43_v1 = vld [vmem:[#allocation2 + $0x8] sm:$0xff]  ;;  %s217_s0 = smov [#allocation7]   ;;  %s112_s23 = sshll.u32 %s250_s2, 4  ;;  %s113_s23 = int_to_ptr.hbm [resolvable:$true] %s112_s23 }
   0xd   :  { %v44_v2 = vunpack.c.l.bf16 %v42_v0  ;;  %v45_v3 = vunpack.c.h.bf16 %v42_v0  ;;  %v46_v6 = vunpack.c.l.bf16 %v43_v1  ;;  %v47_v7 = vunpack.c.h.bf16 %v43_v1  ;;  %v88_v28 = vld [vmem:[#allocation5] sm:$0x3]  ;;  %s110_s1 = sshll.u32 %s217_s0, 4  ;;  %s111_s1 = int_to_ptr.vmem [resolvable:$true] %s110_s1 }
   0xe   :  { %v94_v33 = vperm.slane %v88_v28, 0  ;;  %v95_v34 = vperm.slane %v88_v28, 1 }
   0xf   :  { %v48_v4 = vmul.f32 %v44_v2, %v44_v2  ;;  %v49_v5 = vmul.f32 %v45_v3, %v45_v3  ;;  %v50_v9 = vmul.f32 %v46_v6, %v46_v6  ;;  %v51_v10 = vmul.f32 %v47_v7, %v47_v7 }
  0x11   :  { %v52_v8 = vadd.f32 %v49_v5, %v48_v4  ;;  %v55_v11 = vadd.f32 %v51_v10, %v50_v9 }
  0x13   :  { %53 = vadd.xlane.f32.xlu0 %v52_v8 }
  0x1b   :  { %56 = vadd.xlane.f32.xlu0 %v55_v11 }
  0x86   :  { %v54_v12 = vpop.xlane.xlu0 %53 }
  0x87   :  { %v58_v13 = vmul.f32 0.00390625, %v54_v12 }
  0x89   :  { %v60_v14 = vadd.f32 1e-06, %v58_v13 }
  0x8b   :  { %131 = vrsqrt.f32 %v60_v14  ;;  %vm68_vm1 = vweird.f32 %v60_v14 }
  0x8e   :  { %v57_v15 = vpop.xlane.xlu0 %56 }
  0x8f   :  { %v59_v16 = vmul.f32 0.00390625, %v57_v15 }
  0x91   :  { %v132_v17 = vpop.eup %131  ;;  %v61_v18 = vadd.f32 1e-06, %v59_v16 }
  0x92   :  { %v63_v19 = vmul.f32 %v132_v17, %v60_v14  ;;  %vm69_vm0 = vweird.f32 %v132_v17 }
  0x93   :  { %133 = vrsqrt.f32 %v61_v18  ;;  %vm70_vm2 = vmor %vm68_vm1, %vm69_vm0  ;;  %vm78_vm4 = vweird.f32 %v61_v18 }
  0x94   :  { %v64_v20 = vmul.f32 %v132_v17, %v63_v19 }
  0x96   :  { %v65_v21 = vmul.f32 0.5, %v64_v20 }
  0x98   :  { %v66_v22 = vsub.f32 1.5, %v65_v21 }
  0x99   :  { %v134_v23 = vpop.eup %133 }
  0x9a   :  { %v67_v24 = vmul.f32 %v132_v17, %v66_v22  ;;  %v73_v25 = vmul.f32 %v134_v23, %v61_v18  ;;  %vm79_vm3 = vweird.f32 %v134_v23 }
  0x9b   :  { %vm80_vm5 = vmor %vm78_vm4, %vm79_vm3 }
  0x9c   :  { %v71_v26 = vsel %vm70_vm2, %v132_v17, %v67_v24  ;;  %v74_v27 = vmul.f32 %v134_v23, %v73_v25 }
  0x9d   :  { %v82_v29 = vmul.f32 %v71_v26, %v44_v2  ;;  %v83_v30 = vmul.f32 %v71_v26, %v45_v3 }
  0x9e   :  { %v75_v31 = vmul.f32 0.5, %v74_v27 }
  0x9f   :  { %v86_v32 = vpack.c.bf16 %v83_v30, %v82_v29 }
  0xa0   :  { %v76_v35 = vsub.f32 1.5, %v75_v31 }
  0xa1   :  { %v89_v36 = vunpack.c.l.bf16 %v86_v32  ;;  %v90_v37 = vunpack.c.h.bf16 %v86_v32 }
  0xa2   :  { %v77_v38 = vmul.f32 %v134_v23, %v76_v35 }
  0xa3   :  { %v98_v39 = vmul.f32 %v94_v33, %v89_v36  ;;  %v99_v40 = vmul.f32 %v95_v34, %v90_v37 }
  0xa4   :  { %v81_v41 = vsel %vm80_vm5, %v134_v23, %v77_v38 }
  0xa5   :  { %v84_v42 = vmul.f32 %v81_v41, %v46_v6  ;;  %v85_v43 = vmul.f32 %v81_v41, %v47_v7  ;;  %v102_v44 = vpack.c.bf16 %v99_v40, %v98_v39 }
  0xa7   :  { %v87_v45 = vpack.c.bf16 %v85_v43, %v84_v42  ;;  %104 = vst [vmem:[#allocation7] sm:$0xff] %v102_v44 }
  0xa9   :  { %v91_v46 = vunpack.c.l.bf16 %v87_v45  ;;  %v92_v47 = vunpack.c.h.bf16 %v87_v45 }
  0xab   :  { %v100_v48 = vmul.f32 %v94_v33, %v91_v46  ;;  %v101_v49 = vmul.f32 %v95_v34, %v92_v47 }
  0xad   :  { %v103_v50 = vpack.c.bf16 %v101_v49, %v100_v48 }
  0xaf   :  { %105 = vst [vmem:[#allocation7 + $0x8] sm:$0xff] %v103_v50 }
  0xb0   :  { %118 = dma.vmem_to_hbm [thread:$0]  %s111_s1, 256, %s113_s23, [#allocation4], %s214_s17, %s214_s17, %s215_s18  }
  0xb1   :  { %211 = dma.done.wait [#allocation4], 256  }
  0xb2   :  { %212 = vsyncadd [#allocation4], 4294967040 }
  0xb3   :  { %123 = vsyncpa [#allocation3], 1 }
  0xb4   :  { %124 = vsyncpa [#allocation6], 1 }
  0xb5   :  { %125 = vsyncpa [#allocation4], 1 }

</bundles_post_ra>
